<compile_context>
chip_gen: v7x
topology: tpu7x:2x2x1
jax: 0.10.0
libtpu: 0.0.40
codegen_flags: <defaults>
</compile_context>

<pallas_src>
from types import SimpleNamespace
from typing import Dict, List, Tuple

import jax
import jax.numpy as jnp
from jax.experimental import pallas as pl
from jax.experimental.pallas import tpu as pltpu

_LANE = 128


def _round_up(x: int, m: int) -> int:
    return ((x + m - 1) // m) * m


def _sublane_multiple(itemsize: int) -> int:
    # Sub-32-bit dtypes pack along sublanes: f32 -> 8, bf16 -> 16, int8/fp8 -> 32.
    return max(8, 32 // max(itemsize, 1))


def _vmem_capacity_bytes() -> int:
    """Per-core VMEM capacity (generation-aware); conservative fallback = v7x 64 MiB."""
    try:
        return int(pltpu.get_tpu_info().vmem_capacity_bytes)
    except Exception:
        return 64 << 20


def _group_slices(slices: List[Tuple[str, int, int]], lane: int = _LANE):
    """Greedily merge contiguous parameter slices into lane-dense output slabs.

    A group is closed whenever its cumulative end offset lands on a multiple of
    `lane` (128), so every group except possibly the last starts on a 128-lane
    boundary and has a 128-multiple width -> unmasked stores and full-line HBM
    writeback.  Returns [(group_start, group_width, [(name, local_start, dim)]), ...].
    """
    groups = []
    members: List[Tuple[str, int, int]] = []
    g_start = 0
    g_width = 0
    for name, start, dim in slices:
        if not members:
            g_start = start
        members.append((name, start - g_start, dim))
        g_width += dim
        if (g_start + g_width) % lane == 0:
            groups.append((g_start, g_width, members))
            members = []
            g_width = 0
    if members:
        groups.append((g_start, g_width, members))
    return groups


def _pick_batch_tile(batch: int, total: int, itemsize: int,
                     vmem_budget: int, max_batch_tile=None) -> int:
    """Batch tile: multiple of the sublane quantum, sized to the VMEM budget."""
    sub = _sublane_multiple(itemsize)
    # Pipelined VMEM per batch row: up to 3 input buffers of `total` lanes plus
    # double-buffered outputs whose widths also sum to `total`.
    per_row = 5 * total * itemsize
    cap_rows = max(sub, (vmem_budget // max(per_row, 1)) // sub * sub)
    tb = min(cap_rows, _round_up(batch, sub))
    if max_batch_tile is not None:
        tb = min(tb, max(sub, (max_batch_tile // sub) * sub))
    tb = max(sub, (tb // sub) * sub)
    # v7x megacore: guarantee >=2 grid steps whenever there is enough batch so
    # dimension_semantics=("parallel",) can shard work across both TensorCores.
    if batch >= 2 * sub and pl.cdiv(batch, tb) < 2:
        tb = max(sub, _round_up(batch // 2, sub))
        if tb >= batch:
            tb = max(sub, tb - sub)
    return tb


def _make_in_spec(tb: int, total: int, n_bufs: int) -> pl.BlockSpec:
    if n_bufs > 2:
        try:
            return pl.BlockSpec((tb, total), lambda i: (i, 0),
                                pipeline_mode=pl.Buffered(n_bufs))
        except Exception:
            pass  # fall back to default double buffering
    return pl.BlockSpec((tb, total), lambda i: (i, 0))


class Solver:
    """JAX/Pallas port of the abstract PyTorch Solver base class."""

    def __init__(self, params_fix: Dict, params_learn: Dict) -> None:
        self.params_fix = params_fix
        idx = 0
        for v in params_learn.values():
            v.start = idx
            v.end = idx + v.dim
            idx += v.dim
        self.params_learn = params_learn
        self.total_dim = idx

    def split_theta(self, theta: jnp.ndarray, *,
                    max_batch_tile=None) -> Dict[str, jnp.ndarray]:
        """Slice flat theta [B, total_dim] into per-parameter blocks.

        One fused pallas_call: theta is read from HBM once per batch tile and
        every lane-dense group slab is emitted as a separate kernel output.
        The fine per-parameter split (inside a slab) is done in the wrapper so
        it can fuse with downstream consumers under jit.
        """
        batch, total = theta.shape
        assert total == self.total_dim, (total, self.total_dim)

        names = list(self.params_learn.keys())
        slices = [(n, self.params_learn[n].start, self.params_learn[n].dim)
                  for n in names]
        groups = _group_slices(slices)

        # Tiny theta or a single group: the kernel would be either an
        # all-masked copy (<128 lanes) or a pure theta->theta copy; plain
        # slicing fuses better under XLA and skips launch/per-step overhead.
        if total < _LANE or len(groups) <= 1:
            return {n: jax.lax.slice_in_dim(theta, s, s + d, axis=1)
                    for n, s, d in slices}

        itemsize = jnp.dtype(theta.dtype).itemsize
        vmem_cap = _vmem_capacity_bytes()
        vmem_budget = vmem_cap // 4  # ~25% of per-core VMEM for the working set

        tb = _pick_batch_tile(batch, total, itemsize, vmem_budget, max_batch_tile)
        num_steps = pl.cdiv(batch, tb)
        grid = (num_steps,)

        # Deeper input buffering for long streaming grids (hides exposed DMA
        # latency at step boundaries for ~one extra tile of VMEM).
        n_in_bufs = 3 if num_steps >= 4 else 2
        in_spec = _make_in_spec(tb, total, n_in_bufs)

        group_bounds = [(g[0], g[1]) for g in groups]

        def kernel(theta_ref, *out_refs):
            # theta tile is resident in VMEM once; each lane-dense group slab
            # is a static lane sub-range copy out of it.
            for out_ref, (g_start, g_width) in zip(out_refs, group_bounds):
                out_ref[...] = theta_ref[:, g_start:g_start + g_width]

        out_shape = tuple(jax.ShapeDtypeStruct((batch, w), theta.dtype)
                          for _, w in group_bounds)
        out_specs = [pl.BlockSpec((tb, w), lambda i: (i, 0))
                     for _, w in group_bounds]

        # VMEM limit consistent with the actual pipelined footprint
        # (n_in_bufs input buffers + double-buffered outputs) plus headroom,
        # never above physical capacity.
        footprint = (n_in_bufs + 2) * tb * total * itemsize
        vmem_limit = int(min(vmem_cap, max(footprint + (2 << 20), 4 << 20)))

        slabs = pl.pallas_call(
            kernel,
            out_shape=out_shape,
            grid_spec=pltpu.PrefetchScalarGridSpec(
                num_scalar_prefetch=0,
                grid=grid,
                in_specs=[in_spec],
                out_specs=out_specs,
            ),
            compiler_params=pltpu.CompilerParams(
                # Batch tiles are independent -> shard across the 2 TCs on v7x.
                dimension_semantics=("parallel",),
                vmem_limit_bytes=vmem_limit,
            ),
        )(theta)

        # Fine split inside each slab (only where a slab holds >1 parameter);
        # under jit this fuses with downstream consumers.
        result: Dict[str, jnp.ndarray] = {}
        for slab, (g_start, g_width, members) in zip(slabs, groups):
            if len(members) == 1:
                result[members[0][0]] = slab
            else:
                for name, loc, dim in members:
                    result[name] = jax.lax.slice_in_dim(slab, loc, loc + dim, axis=1)
        return result

    def _setup(self, tau: Dict, theta: jnp.ndarray):
        raise NotImplementedError  # abstract in the reference module

    def forward(self, tau: Dict, theta: jnp.ndarray):
        raise NotImplementedError  # abstract in the reference module


if __name__ == "__main__":
    key = jax.random.PRNGKey(0)
    k1, k2, k3 = jax.random.split(key, 3)
    ok = True

    # --- Case 1: kernel path. Parameter layout exercises lane-dense grouping:
    #     x0+v0 merge into one 128-wide slab, alpha is its own 128-wide slab,
    #     beta is the ragged tail slab.  batch=32 -> >=2 grid steps.
    params_learn = {
        "x0":    SimpleNamespace(dim=40),
        "v0":    SimpleNamespace(dim=88),
        "alpha": SimpleNamespace(dim=128),
        "beta":  SimpleNamespace(dim=56),
    }
    solver = Solver({"n_iter": 4}, params_learn)
    batch = 32
    theta = jax.random.normal(k1, (batch, solver.total_dim), dtype=jnp.float32)

    out = solver.split_theta(theta)
    for arr in out.values():
        jax.block_until_ready(arr)
    for name, v in params_learn.items():
        ok &= out[name].shape == (batch, v.dim)
        ok &= bool(jnp.allclose(out[name], theta[:, v.start:v.end]))

    # --- Case 2: kernel path with a ragged batch grid (26 rows, tile 8 ->
    #     4 grid steps) which also exercises the deeper input buffering.
    batch2 = 26
    theta2 = jax.random.normal(k2, (batch2, solver.total_dim), dtype=jnp.float32)
    out2 = solver.split_theta(theta2, max_batch_tile=8)
    for arr in out2.values():
        jax.block_until_ready(arr)
    for name, v in params_learn.items():
        ok &= out2[name].shape == (batch2, v.dim)
        ok &= bool(jnp.allclose(out2[name], theta2[:, v.start:v.end]))

    # --- Case 3: tiny theta (total_dim=32 < 128) -> plain-JAX bypass.
    small_learn = {"a": SimpleNamespace(dim=8), "b": SimpleNamespace(dim=24)}
    small_solver = Solver({}, small_learn)
    theta3 = jax.random.normal(k3, (2, small_solver.total_dim), dtype=jnp.float32)
    out3 = small_solver.split_theta(theta3)
    for arr in out3.values():
        jax.block_until_ready(arr)
    for name, v in small_learn.items():
        ok &= bool(jnp.allclose(out3[name], theta3[:, v.start:v.end]))

    if ok:
        print("KERNEL_OK")
</pallas_src>

<mosaic_0001>
module attributes {stable_mosaic.version = 11 : i64} {
  func.func @kernel(%arg0: i32, %arg1: memref<16x312xf32, #tpu.memory_space<vmem>>, %arg2: memref<16x128xf32, #tpu.memory_space<vmem>>, %arg3: memref<16x128xf32, #tpu.memory_space<vmem>>, %arg4: memref<16x56xf32, #tpu.memory_space<vmem>>) attributes {dimension_semantics = [#tpu.dimension_semantics<parallel>], iteration_bounds = array<i64: 2>, scalar_prefetch = 0 : i64, scratch_operands = 0 : i64, tpu.core_type = #tpu.core_type<tc>, window_params = [{transform_indices = @transform_0, window_bounds = array<i64: 16, 312>}, {transform_indices = @transform_1, window_bounds = array<i64: 16, 128>}, {transform_indices = @transform_2, window_bounds = array<i64: 16, 128>}, {transform_indices = @transform_3, window_bounds = array<i64: 16, 56>}]} {
    %c0 = arith.constant 0 : index
    %c0_0 = arith.constant 0 : index
    %0 = vector.load %arg1[%c0, %c0_0] : memref<16x312xf32, #tpu.memory_space<vmem>>, vector<16x128xf32>
    %c0_1 = arith.constant 0 : index
    %c0_2 = arith.constant 0 : index
    %1 = vector.load %arg2[%c0_1, %c0_2] : memref<16x128xf32, #tpu.memory_space<vmem>>, vector<16x128xf32>
    tpu.vector_store %arg2[%c0_1, %c0_2], %0 {strides = array<i32>} : memref<16x128xf32, #tpu.memory_space<vmem>>, vector<16x128xf32>,
    %c0_3 = arith.constant 0 : index
    %c128 = arith.constant 128 : index
    %2 = vector.load %arg1[%c0_3, %c128] : memref<16x312xf32, #tpu.memory_space<vmem>>, vector<16x128xf32>
    %c0_4 = arith.constant 0 : index
    %c0_5 = arith.constant 0 : index
    %3 = vector.load %arg3[%c0_4, %c0_5] : memref<16x128xf32, #tpu.memory_space<vmem>>, vector<16x128xf32>
    tpu.vector_store %arg3[%c0_4, %c0_5], %2 {strides = array<i32>} : memref<16x128xf32, #tpu.memory_space<vmem>>, vector<16x128xf32>,
    %c0_6 = arith.constant 0 : index
    %c256 = arith.constant 256 : index
    %4 = vector.load %arg1[%c0_6, %c256] : memref<16x312xf32, #tpu.memory_space<vmem>>, vector<16x56xf32>
    %c0_7 = arith.constant 0 : index
    %c0_8 = arith.constant 0 : index
    %5 = vector.load %arg4[%c0_7, %c0_8] : memref<16x56xf32, #tpu.memory_space<vmem>>, vector<16x56xf32>
    tpu.vector_store %arg4[%c0_7, %c0_8], %4 {strides = array<i32>} : memref<16x56xf32, #tpu.memory_space<vmem>>, vector<16x56xf32>,
    return
  }
  func.func @transform_0(%arg0: i32) -> (i32, i32) {
    %c0_i32 = arith.constant 0 : i32
    %c0_i32_0 = arith.constant 0 : i32
    return %arg0, %c0_i32 : i32, i32
  }
  func.func @transform_1(%arg0: i32) -> (i32, i32) {
    %c0_i32 = arith.constant 0 : i32
    %c0_i32_0 = arith.constant 0 : i32
    return %arg0, %c0_i32 : i32, i32
  }
  func.func @transform_2(%arg0: i32) -> (i32, i32) {
    %c0_i32 = arith.constant 0 : i32
    %c0_i32_0 = arith.constant 0 : i32
    return %arg0, %c0_i32 : i32, i32
  }
  func.func @transform_3(%arg0: i32) -> (i32, i32) {
    %c0_i32 = arith.constant 0 : i32
    %c0_i32_0 = arith.constant 0 : i32
    return %arg0, %c0_i32 : i32, i32
  }
}

</mosaic_0001>

<bundles_post_ra>
// kernel: tpu_custom_call.1
= control target key start
LH: loop header
LB: loop body
LE: loop exit
PB: predicated region body
PF: predicated region fallthrough
CT: control target
= control target key end

     0   :  { %9 = vsyncpa [#allocation3], 0  ;;  %s924_s0 = inlined_call_operand.hbm [shape: f32[32,312], index: 0, kind: input, shape index: {}]   ;;  %s925_s1 = inlined_call_operand.hbm [shape: f32[32,128], index: 1, kind: output, shape index: {0}]   ;;  %s926_s2 = inlined_call_operand.hbm [shape: f32[32,128], index: 2, kind: output, shape index: {1}]   ;;  %s927_s3 = inlined_call_operand.hbm [shape: f32[32,56], index: 3, kind: output, shape index: {2}]  }
   0x1   :  { %11 = vsyncpa [#allocation3 + $0x1], 0 }
   0x2   :  { %12 = vsyncpa [#allocation4], 0 }
   0x3   :  { %14 = vsyncpa [#allocation4 + $0x1], 0 }
   0x4   :  { %15 = vsyncpa [#allocation7], 0 }
   0x5   :  { %17 = vsyncpa [#allocation7 + $0x1], 0  ;;  %s688_s12 = smov 0   ;;  %s690_s13 = smov 0  }
   0x6   :  { %s692_s14 = smov 0   ;;  %s694_s15 = smov 0  }
   0x7 LB: > { %s709_s16 = sadd.s32 4294967295, %s658_s15   ;;  %s415_s17 = sadd.s32 4294967294, %s658_s15   ;;  %s658_s15 = sphi %s694_s15, %s939_s15   ;;  %s654_s14 = sphi %s692_s14, %s938_s14   ;;  %s650_s13 = sphi %s690_s13, %s937_s13   ;;  %s646_s12 = sphi %s688_s12, %s936_s12  }
   0x8   : > { %s713_s18 = sadd.s32 1, %s658_s15   ;;  %s30_s19 = sadd.s32 1, %s654_s14 }
   0x9   : > { %s27_s20 = ssub.s32 %s658_s15, %s713_s18  ;;  %p37_p0 = scmp.ne.s32.totalorder %s654_s14, %s650_s13 }
   0xa   : > { %p28_p1 = scmp.eq.s32.totalorder %s27_s20, 0  ;;  %p38_p2 = scmp.eq.s32.totalorder %s658_s15, 0 }
   0xb   : > { %p43_p3 = scmp.ne.s32.totalorder %s650_s13, %s646_s12  ;;  %p44_p4 = scmp.eq.s32.totalorder %s709_s16, 0 }
   0xc   : > { %s725_s21 = scalar_select %p28_p1, %s654_s14, %s30_s19  }
   0xd   : > { %p39_p5 = por %p38_p2, %p37_p0  ;;  %p727_p6 = por %p44_p4, %p43_p3 }
   0xe   : > { %p67_p7 = scmp.eq.s32.totalorder %s709_s16, 1  ;;  %p73_p8 = scmp.eq.s32.totalorder %s415_s17, 1 }
   0xf   : > { %p464_p10 = scmp.lt.s32.totalorder %s658_s15, 2  ;;  %s145_s25 = sand.u32 1, %s654_s14  }
  0x10   : > { %p736_p11 = por %p67_p7, %p37_p0  ;;  %p740_p12 = por %p73_p8, %p43_p3 }
  0x11   : > { %s440_s26 = smul.u32 768, %s658_s15  ;;  %p751_p13 = pnand %p464_p10, %p39_p5 }
  0x12   : > { %s930_s23 = scalar_select %p736_p11, 1, 0 }
  0x13   : > { %s931_s24 = scalar_select %p740_p12, 1, 0 }
  0x14   : > { %s439_s27 = smul.u32 48, %s145_s25  ;;  %s749_s30 = scalar_lea.hbm %s924_s0, %s440_s26 }
  0x15   : > { %s757_s7 = scalar_lea.sflag [#allocation3], %s145_s25  ;;  %s502_s8 = scalar_lea.hbm %s749_s30, 768 }
  0x16   : > { %s149_s5 = scalar_lea.vmem [#allocation2], %s439_s27  ;;  %p503_p0 = scmp.ne.s32.totalorder %s749_s30, %s502_s8 }
  0x17   : > { %s157_s6 = sshll.u32 %s149_s5, 4  ;;  %p504_p1 = pneg %p751_p13  ;;  %s755_s6 = int_to_ptr.vmem [resolvable:$true] %s157_s6 }
  0x18   : > { %s507_s11 = scalar_lea.hbm %s924_s0, 1536  ;;  %p508_p4 = scmp.lt.u32.totalorder %s749_s30, %s924_s0 }
  0x19   : > { %p505_p2 = pnand %p504_p1, %p503_p0  ;;  %p509_p5 = scmp.lt.u32.totalorder %s507_s11, %s502_s8 }
  0x1a   : > { %p511_p8 = scmp.lt.u32.totalorder %s502_s8, %s749_s30 }
  0x1b   : > { %p506_p3 = pneg %p505_p2  ;;  %p510_p7 = por %p509_p5, %p508_p4 }
  0x1d   : > { %p512_p10 = por %p511_p8, %p510_p7 }
  0x1f   : > { %p513_p9 = pnand %p512_p10, %p506_p3 }
  0x21   : > { %516 = shalt.err (!%p513_p9)
}
  0x22   : > { %s517_s25 = scalar_lea.vmem %s755_s6, 768  ;;  %s660_s26 = smov [#allocation2]  }
  0x23   : > { %p518_p0 = scmp.ne.s32.totalorder %s755_s6, %s517_s25  ;;  %s522_s27 = sshll.u32 %s660_s26, 4  ;;  %s523_s27 = int_to_ptr.vmem [resolvable:$false] %s522_s27 }
  0x24   : > { %s524_s28 = scalar_lea.vmem %s523_s27, 1536  ;;  %p525_p11 = scmp.lt.s32.totalorder %s755_s6, %s523_s27 }
  0x25   : > { %p520_p2 = pnand %p518_p0, %p504_p1  ;;  %p526_p4 = scmp.lt.s32.totalorder %s524_s28, %s517_s25 }
  0x27   : > { %p521_p12 = pneg %p520_p2  ;;  %p527_p5 = por %p526_p4, %p525_p11 }
  0x29   : > { %p528_p7 = pnand %p527_p5, %p521_p12 }
  0x2b   : > { %531 = shalt.err (!%p528_p7)
}
  0x2c   : > { %s661_s29 = smov 384   ;;  %s662_s5 = smov 24  }
  0x2d   : > { %453 = dma.hbm_to_vmem [thread:$0]  (!%p751_p13), %s749_s30, 768, %s755_s6, %s757_s7, %s661_s29, %s661_s29, %s662_s5  }
  0x2e   : > { %p421_p9 = scmp.ge.s32.totalorder %s658_s15, 1  ;;  %p165_p1 = scmp.lt.s32.totalorder %s658_s15, 3 }
  0x30   : > { %p166_p3 = pnand %p421_p9, %p165_p1 }
  0x31   : > { %s788_s8 = sand.u32 (!%p166_p3), 1, %s650_s13  }
  0x32   : > { %169 = sbr.rel (%p166_p3) target bundleno = 134 (0x86), region = 24  ;;  %s172_s10 = scalar_lea.sflag (!%p166_p3), [#allocation3], %s788_s8 }
  0x33   : > { %s441_s9 = smul.u32 (!%p166_p3), 48, %s788_s8 }
  0x35   : > { %s175_s11 = scalar_lea.vmem (!%p166_p3), [#allocation2], %s441_s9 }
  0x39   : > { %633 = dma.done.wait (%p727_p6), %s172_s10, 768  }
  0x3a   : > { %635 = vsyncadd (%p727_p6), %s172_s10, 4294966528  ;;  %s422_s30 = sshll.u32 %s788_s8, 4  ;;  %s230_s4 = sand.u32 1, %s709_s16   ;;  %vm222_vm0 = vcmask 457728   ;;  %v216_v0 = vld [vmem:[%s175_s11 + $0x8] sm:$0xff]  ;;  %v217_v1 = vld [vmem:[%s175_s11 + $0x20] sm:$0xff] }
  0x3b   : > { %s200_s6 = scalar_lea.vmem [#allocation6], %s422_s30  ;;  %s193_s19 = scalar_lea.vmem [#allocation5], %s422_s30  ;;  %v212_v2 = vld [vmem:[%s175_s11] sm:$0xff]  ;;  %v213_v3 = vld [vmem:[%s175_s11 + $0x18] sm:$0xff]  ;;  %v220_v4 = vld [vmem:[%s175_s11 + $0x10] sm:$0xff] }
  0x3c   : > { %s265_s7 = sshll.u32 %s200_s6, 4  ;;  %s249_s20 = sshll.u32 %s193_s19, 4  ;;  %218 = vst [vmem:[%s200_s6] sm:$0xff] %v216_v0  ;;  %219 = vst [vmem:[%s200_s6 + $0x8] sm:$0xff] %v217_v1  ;;  %v221_v5 = vld [vmem:[%s175_s11 + $0x28] sm:$0xff]  ;;  %s798_s7 = int_to_ptr.vmem [resolvable:$true] %s265_s7  ;;  %s800_s20 = int_to_ptr.vmem [resolvable:$true] %s249_s20 }
  0x3d   : > { %s207_s25 = scalar_lea.vmem [#allocation8], %s422_s30  ;;  %s803_s27 = sshll.u32 %s709_s16, 8  ;;  %214 = vst [vmem:[%s193_s19] sm:$0xff] %v212_v2  ;;  %215 = vst [vmem:[%s193_s19 + $0x8] sm:$0xff] %v213_v3 }
  0x3e   : > { %s281_s26 = sshll.u32 %s207_s25, 4  ;;  %s811_s29 = scalar_lea.hbm %s926_s2, %s803_s27  ;;  %223 = vst.msk [vmem:[%s207_s25] sm:$0xff] %vm222_vm0, %v220_v4  ;;  %224 = vst.msk [vmem:[%s207_s25 + $0x8] sm:$0xff] %vm222_vm0, %v221_v5  ;;  %s805_s26 = int_to_ptr.vmem [resolvable:$true] %s281_s26 }
  0x3f   : > { %s817_s9 = scalar_lea.hbm %s925_s1, %s803_s27  ;;  %s819_s10 = scalar_lea.sflag [#allocation7], %s230_s4 }
  0x40   : > { %s532_s30 = scalar_lea.vmem %s798_s7, 256  ;;  %p933_p11 = scmp.ne.s32.totalorder %s930_s23, 0 }
  0x41   : > { %p533_p6 = scmp.ne.s32.totalorder %s798_s7, %s532_s30  ;;  %s663_s6 = smov [#allocation6]  }
  0x42   : > { %s536_s22 = sshll.u32 %s663_s6, 4  ;;  %s537_s22 = int_to_ptr.vmem [resolvable:$false] %s536_s22 }
  0x43   : > { %p534_p12 = pnand %p533_p6, %p933_p11  ;;  %s538_s28 = scalar_lea.vmem %s537_s22, 512 }
  0x44   : > { %p539_p8 = scmp.lt.s32.totalorder %s798_s7, %s537_s22  ;;  %p540_p10 = scmp.lt.s32.totalorder %s538_s28, %s532_s30 }
  0x45   : > { %p535_p13 = pneg %p534_p12 }
  0x46   : > { %p541_p0 = por %p540_p10, %p539_p8 }
  0x48   : > { %p542_p2 = pnand %p541_p0, %p535_p13 }
  0x4a   : > { %545 = shalt.err (!%p542_p2)
}
  0x4b   : > { %s546_s11 = scalar_lea.hbm %s811_s29, 256  ;;  %s550_s25 = scalar_lea.hbm %s926_s2, 512 }
  0x4c   : > { %p547_p4 = scmp.ne.s32.totalorder %s811_s29, %s546_s11  ;;  %p551_p9 = scmp.lt.u32.totalorder %s811_s29, %s926_s2 }
  0x4d   : > { %p552_p1 = scmp.lt.u32.totalorder %s550_s25, %s546_s11  ;;  %p554_p6 = scmp.lt.u32.totalorder %s546_s11, %s811_s29 }
  0x4e   : > { %p548_p5 = pnand %p547_p4, %p933_p11 }
  0x4f   : > { %p553_p3 = por %p552_p1, %p551_p9 }
  0x50   : > { %p549_p7 = pneg %p548_p5 }
  0x51   : > { %p555_p12 = por %p554_p6, %p553_p3 }
  0x53   : > { %p556_p13 = pnand %p555_p12, %p549_p7 }
  0x55   : > { %559 = shalt.err (!%p556_p13)
}
  0x56   : > { %s664_s30 = smov 128   ;;  %s665_s6 = smov 8  }
  0x57   : > { %445 = dma.vmem_to_hbm [thread:$0]  (%p933_p11), %s798_s7, 256, %s811_s29, %s819_s10, %s664_s30, %s664_s30, %s665_s6  }
  0x58   : > { %s226_s22 = scalar_lea.sflag [#allocation4], %s788_s8  ;;  %s560_s28 = scalar_lea.vmem %s800_s20, 256 }
  0x59   : > { %p561_p8 = scmp.ne.s32.totalorder %s800_s20, %s560_s28  ;;  %s666_s11 = smov [#allocation5]  }
  0x5a   : > { %s564_s4 = sshll.u32 %s666_s11, 4  ;;  %s565_s4 = int_to_ptr.vmem [resolvable:$false] %s564_s4 }
  0x5b   : > { %p562_p10 = pnand %p561_p8, %p933_p11  ;;  %s566_s19 = scalar_lea.vmem %s565_s4, 512 }
  0x5c   : > { %p567_p2 = scmp.lt.s32.totalorder %s800_s20, %s565_s4  ;;  %p568_p4 = scmp.lt.s32.totalorder %s566_s19, %s560_s28 }
  0x5d   : > { %p563_p0 = pneg %p562_p10 }
  0x5e   : > { %p569_p5 = por %p568_p4, %p567_p2 }
  0x60   : > { %p570_p7 = pnand %p569_p5, %p563_p0 }
  0x62   : > { %573 = shalt.err (!%p570_p7)
}
  0x63   : > { %s574_s7 = scalar_lea.hbm %s817_s9, 256  ;;  %s578_s16 = scalar_lea.hbm %s925_s1, 512 }
  0x64   : > { %p575_p9 = scmp.ne.s32.totalorder %s817_s9, %s574_s7  ;;  %p579_p6 = scmp.lt.u32.totalorder %s817_s9, %s925_s1 }
  0x65   : > { %p580_p12 = scmp.lt.u32.totalorder %s578_s16, %s574_s7  ;;  %p582_p8 = scmp.lt.u32.totalorder %s574_s7, %s817_s9 }
  0x66   : > { %p576_p1 = pnand %p575_p9, %p933_p11 }
  0x67   : > { %p581_p13 = por %p580_p12, %p579_p6 }
  0x68   : > { %p577_p3 = pneg %p576_p1 }
  0x69   : > { %p583_p10 = por %p582_p8, %p581_p13 }
  0x6b   : > { %p584_p0 = pnand %p583_p10, %p577_p3 }
  0x6d   : > { %587 = shalt.err (!%p584_p0)
}
  0x6e   : > { %444 = dma.vmem_to_hbm [thread:$0]  (%p933_p11), %s800_s20, 256, %s817_s9, %s226_s22, %s664_s30, %s664_s30, %s665_s6  }
  0x6f   : > { %s877_s19 = scalar_lea.hbm %s927_s3, %s803_s27  ;;  %s588_s7 = scalar_lea.vmem %s805_s26, 256 }
  0x70   : > { %p589_p2 = scmp.ne.s32.totalorder %s805_s26, %s588_s7  ;;  %s667_s29 = smov [#allocation8]  }
  0x71   : > { %s592_s8 = sshll.u32 %s667_s29, 4  ;;  %s593_s8 = int_to_ptr.vmem [resolvable:$false] %s592_s8 }
  0x72   : > { %p590_p4 = pnand %p589_p2, %p933_p11  ;;  %s594_s25 = scalar_lea.vmem %s593_s8, 512 }
  0x73   : > { %p595_p7 = scmp.lt.s32.totalorder %s805_s26, %s593_s8  ;;  %p596_p9 = scmp.lt.s32.totalorder %s594_s25, %s588_s7 }
  0x74   : > { %p591_p5 = pneg %p590_p4 }
  0x75   : > { %p597_p1 = por %p596_p9, %p595_p7 }
  0x77   : > { %p598_p3 = pnand %p597_p1, %p591_p5 }
  0x79   : > { %601 = shalt.err (!%p598_p3)
}
  0x7a   : > { %s602_s20 = scalar_lea.hbm %s877_s19, 256  ;;  %s606_s22 = scalar_lea.hbm %s927_s3, 512 }
  0x7b   : > { %p603_p6 = scmp.ne.s32.totalorder %s877_s19, %s602_s20  ;;  %p607_p8 = scmp.lt.u32.totalorder %s877_s19, %s927_s3 }
  0x7c   : > { %p608_p10 = scmp.lt.u32.totalorder %s606_s22, %s602_s20  ;;  %p610_p2 = scmp.lt.u32.totalorder %s602_s20, %s877_s19 }
  0x7d   : > { %p604_p12 = pnand %p603_p6, %p933_p11 }
  0x7e   : > { %p609_p0 = por %p608_p10, %p607_p8 }
  0x7f   : > { %p605_p13 = pneg %p604_p12 }
  0x80   : > { %p611_p4 = por %p610_p2, %p609_p0 }
  0x82   : > { %p612_p5 = pnand %p611_p4, %p605_p13 }
  0x84   : > { %615 = shalt.err (!%p612_p5)
}
  0x85   : > { %446 = dma.vmem_to_hbm [thread:$0]  (%p933_p11), %s805_s26, 256, %s877_s19, %s819_s10, %s664_s30, %s664_s30, %s665_s6  }
  0x86 PF: > { %s296_s11 = sand.u32 1, %s646_s12   ;;  %p934_p7 = scmp.ne.s32.totalorder %s931_s24, 0 }
  0x87   : > { %p935_p9 = scmp.ge.s32.totalorder %s658_s15, 2  ;;  %s297_s28 = scalar_lea.sflag [#allocation4], %s296_s11 }
  0x89   : > { %p455_p1 = pnand %p935_p9, %p934_p7 }
  0x8b   : > { %637 = dma.done.wait (!%p455_p1), %s297_s28, 256  }
  0x8c   : > { %639 = vsyncadd (!%p455_p1), %s297_s28, 4294967040  ;;  %s305_s23 = sand.u32 1, %s415_s17  }
  0x8d   : > { %s306_s4 = scalar_lea.sflag [#allocation7], %s305_s23 }
  0x8e   : > { %641 = dma.done.wait (!%p455_p1), %s306_s4, 512  }
  0x8f   : > { %643 = vsyncadd (!%p455_p1), %s306_s4, 4294966784  ;;  %p20_p11 = scmp.ge.s32.totalorder %s713_s18, 4   ;;  %s936_s12 = smov %s650_s13 }
  0x90   : > { %s937_s13 = smov %s654_s14  ;;  %s938_s14 = smov %s725_s21 }
  0x91   : > { %s939_s15 = smov %s713_s18  ;;  %22 = sbr.rel (!%p20_p11) target bundleno = 7 (0x7), region = 101 }
  0x98   :  { %320 = vsyncpa [#allocation3], 1 }
  0x99   :  { %322 = vsyncpa [#allocation3 + $0x1], 1 }
  0x9a   :  { %323 = vsyncpa [#allocation4], 1 }
  0x9b   :  { %325 = vsyncpa [#allocation4 + $0x1], 1 }
  0x9c   :  { %326 = vsyncpa [#allocation7], 1 }
  0x9d   :  { %328 = vsyncpa [#allocation7 + $0x1], 1 }

</bundles_post_ra>
